<compile_context>
chip_gen: v5e
topology: v5e:2x2
jax: 0.10.0
libtpu: 0.0.40
codegen_flags: <defaults>
</compile_context>

<pallas_src>
import math

import jax
import jax.numpy as jnp
from jax.experimental import pallas as pl
from jax.experimental.pallas import tpu as pltpu


def _vmem_capacity_bytes():
    """Physical VMEM per TensorCore, with a conservative fallback."""
    try:
        info = pltpu.get_tpu_info()
        cap = int(getattr(info, "vmem_capacity_bytes", 0) or 0)
        if cap > 0:
            return cap
    except Exception:
        pass
    return 64 * 1024 * 1024  # v7x-sized fallback: safe on every generation


def _num_tensorcores_per_chip():
    """Best-effort detection of multi-TC chips (v7x); default to 1 (v5e/v6e)."""
    try:
        kind = jax.devices()[0].device_kind.lower()
        if "7" in kind:
            return 2
    except Exception:
        pass
    return 1


def _largest_divisor_leq(n, cap):
    cap = max(1, min(n, cap))
    for d in range(cap, 0, -1):
        if n % d == 0:
            return d
    return 1


def _stacked_linear_kernel(x_ref, w_ref, b_ref, o_ref):
    # x_ref: (Cb, B, K)   w_ref: (Cb, Tn, K)
    # b_ref: (Cb, Tn) or (Cb, 1, Tn)   o_ref: (Cb, B, Tn)
    acc = jax.lax.dot_general(
        x_ref[...], w_ref[...],
        dimension_numbers=(((2,), (2,)), ((0,), (0,))),  # contract K, batch Cb
        preferred_element_type=jnp.float32)              # (Cb, B, Tn) in f32
    b = b_ref[...].astype(jnp.float32)
    if b.ndim == 2:                                      # static (trace-time)
        b = b[:, None, :]
    o_ref[...] = (acc + b).astype(o_ref.dtype)


def stacked_linear(x, weight, bias, *, compute_dtype=None,
                   block_c=None, block_n=None, vmem_limit_bytes=None):
    """x: (C, B, K), weight: (C, N, K), bias: (C, N) -> (C, B, N).

    Equivalent to torch.baddbmm(bias[:, None, :], x, weight.transpose(1, 2)).
    """
    C, B, K = x.shape
    Cw, N, Kw = weight.shape
    assert (Cw, Kw) == (C, K) and bias.shape == (C, N)
    out_dtype = x.dtype

    # Optional reduced-precision streaming of the big operands (accumulation and
    # the bias add stay in f32).  Numerics change -> off by default.
    if compute_dtype is not None:
        x = x.astype(compute_dtype)
        weight = weight.astype(compute_dtype)
    in_isz = jnp.dtype(x.dtype).itemsize
    b_isz = jnp.dtype(bias.dtype).itemsize
    out_isz = jnp.dtype(out_dtype).itemsize

    # ---- out_features tile --------------------------------------------------
    # Only tile N when no padding would be needed (N % 128 == 0); otherwise a
    # full-extent N block keeps the call pad-free (lane-masked stores only).
    if block_n is None:
        if N % 128 == 0 and N > 512:
            for cand in (512, 256, 128):
                if N % cand == 0:
                    block_n = cand
                    break
        else:
            block_n = N
    assert N % block_n == 0 and (block_n % 128 == 0 or block_n == N)
    grid_n = N // block_n

    # ---- VMEM budget (generation-aware) -------------------------------------
    if vmem_limit_bytes is None:
        vmem_limit_bytes = min(int(0.85 * _vmem_capacity_bytes()),
                               112 * 1024 * 1024)

    # ---- channel block: largest divisor of C whose double-buffered footprint
    #      (including the f32 dot_general intermediate) fits the budget. -------
    per_ch = (2 * (B * K * in_isz             # x tile
                   + block_n * K * in_isz     # weight tile
                   + block_n * b_isz          # bias tile
                   + B * block_n * out_isz)   # output tile
              + B * block_n * 4)              # f32 accumulator
    budget = int(0.6 * vmem_limit_bytes)      # headroom for compiler scratch
    if block_c is None:
        block_c = _largest_divisor_leq(C, max(1, budget // per_ch))
        # Only on multi-TC chips, and only when there is no N grid axis to
        # shard, keep >= 2 channel steps so both TensorCores have work.
        if (_num_tensorcores_per_chip() > 1 and grid_n == 1
                and C >= 2 and C // block_c < 2):
            block_c = _largest_divisor_leq(C, C // 2)
    assert C % block_c == 0
    grid_c = C // block_c
    grid = (grid_c, grid_n)

    # TODO(synk): add K (innermost, 'arbitrary', f32 scratch accumulator) and B
    # (parallel) grid axes as guards for very large in_features / batch, where
    # even block_c == 1 would exceed the VMEM budget.

    # ---- bias layout: sublane-dense 2-D tile when layout rules allow it ------
    bias_2d_ok = (block_c % 8 == 0) or (block_c == C)
    if bias_2d_ok:
        bias_arg = bias
        bias_spec = pl.BlockSpec((block_c, block_n), lambda c, n: (c, n))
    else:
        bias_arg = bias.reshape(C, 1, N)   # tiny array; negligible copy
        bias_spec = pl.BlockSpec((block_c, 1, block_n), lambda c, n: (c, 0, n))

    cost = pl.CostEstimate(
        flops=2 * C * B * N * K,
        bytes_accessed=C * (N * K * in_isz + B * K * in_isz
                            + N * b_isz + B * N * out_isz),
        transcendentals=0)

    return pl.pallas_call(
        _stacked_linear_kernel,
        out_shape=jax.ShapeDtypeStruct((C, B, N), out_dtype),
        grid_spec=pltpu.PrefetchScalarGridSpec(
            num_scalar_prefetch=0,
            grid=grid,
            in_specs=[
                pl.BlockSpec((block_c, B, K), lambda c, n: (c, 0, 0)),
                pl.BlockSpec((block_c, block_n, K), lambda c, n: (c, n, 0)),
                bias_spec,
            ],
            out_specs=pl.BlockSpec((block_c, B, block_n),
                                   lambda c, n: (c, 0, n)),
        ),
        compiler_params=pltpu.CompilerParams(
            dimension_semantics=("parallel", "parallel"),
            vmem_limit_bytes=vmem_limit_bytes,
        ),
        cost_estimate=cost,
    )(x, weight, bias_arg)


def init_params(key, in_features, out_features, channels, dtype=jnp.float32):
    """Deterministic init mirroring PyTorch reset_parameters():
    kaiming_uniform_(a=sqrt(5)) per (out, in) slice == U(-1/sqrt(fan_in), 1/sqrt(fan_in)),
    bias ~ U(-1/sqrt(fan_in), 1/sqrt(fan_in))."""
    kw, kb = jax.random.split(key)
    bound = 1.0 / math.sqrt(in_features) if in_features > 0 else 0.0
    weight = jax.random.uniform(
        kw, (channels, out_features, in_features), dtype=dtype,
        minval=-bound, maxval=bound)
    bias = jax.random.uniform(
        kb, (channels, out_features), dtype=dtype,
        minval=-bound, maxval=bound)
    return weight, bias


if __name__ == "__main__":
    key = jax.random.PRNGKey(0)
    k_x, k_p = jax.random.split(key)

    channels = 4
    batch = 8
    in_features = 32
    out_features = 32

    x = jax.random.normal(k_x, (channels, batch, in_features), dtype=jnp.float32)
    weight, bias = init_params(k_p, in_features, out_features, channels)

    out = jax.block_until_ready(stacked_linear(x, weight, bias))

    # reference check in plain JAX (baddbmm semantics)
    ref = jnp.einsum("cbk,cnk->cbn", x, weight) + bias[:, None, :]
    assert out.shape == (channels, batch, out_features)
    assert jnp.allclose(out, ref, atol=1e-5, rtol=1e-5)

    print("KERNEL_OK")
</pallas_src>

<mosaic_0001>
module attributes {stable_mosaic.version = 11 : i64} {
  func.func @_stacked_linear_kernel(%arg0: i32, %arg1: i32, %arg2: memref<4x8x32xf32, #tpu.memory_space<vmem>>, %arg3: memref<4x32x32xf32, #tpu.memory_space<vmem>>, %arg4: memref<4x32xf32, #tpu.memory_space<vmem>>, %arg5: memref<4x8x32xf32, #tpu.memory_space<vmem>>) attributes {dimension_semantics = [#tpu.dimension_semantics<parallel>, #tpu.dimension_semantics<parallel>], iteration_bounds = array<i64: 1, 1>, scalar_prefetch = 0 : i64, scratch_operands = 0 : i64, tpu.core_type = #tpu.core_type<tc>, window_params = [{transform_indices = @transform_0, window_bounds = array<i64: 4, 8, 32>}, {transform_indices = @transform_1, window_bounds = array<i64: 4, 32, 32>}, {transform_indices = @transform_2, window_bounds = array<i64: 4, 32>}, {transform_indices = @transform_3, window_bounds = array<i64: 4, 8, 32>}]} {
    %c0 = arith.constant 0 : index
    %c0_0 = arith.constant 0 : index
    %c0_1 = arith.constant 0 : index
    %0 = vector.load %arg2[%c0, %c0_0, %c0_1] : memref<4x8x32xf32, #tpu.memory_space<vmem>>, vector<4x8x32xf32>
    %c0_2 = arith.constant 0 : index
    %c0_3 = arith.constant 0 : index
    %c0_4 = arith.constant 0 : index
    %1 = vector.load %arg3[%c0_2, %c0_3, %c0_4] : memref<4x32x32xf32, #tpu.memory_space<vmem>>, vector<4x32x32xf32>
    %cst = arith.constant dense<0.000000e+00> : vector<4x8x32xf32>
    %2 = tpu.matmul %0, %1, %cst {dimension_numbers = #tpu.dot_dimension_numbers<[2], [2], [1], [1], [0, 0, 0, 1, 1, 1], [0], [0]>} : vector<4x8x32xf32>, vector<4x32x32xf32>, vector<4x8x32xf32> -> vector<4x8x32xf32>
    %c0_5 = arith.constant 0 : index
    %c0_6 = arith.constant 0 : index
    %3 = vector.load %arg4[%c0_5, %c0_6] : memref<4x32xf32, #tpu.memory_space<vmem>>, vector<4x32xf32>
    %4 = vector.shape_cast %3 : vector<4x32xf32> to vector<4x1x32xf32>
    %5 = vector.broadcast %4 : vector<4x1x32xf32> to vector<4x8x32xf32>
    %6 = arith.addf %2, %5 : vector<4x8x32xf32>
    %c0_7 = arith.constant 0 : index
    %c0_8 = arith.constant 0 : index
    %c0_9 = arith.constant 0 : index
    %7 = vector.load %arg5[%c0_7, %c0_8, %c0_9] : memref<4x8x32xf32, #tpu.memory_space<vmem>>, vector<4x8x32xf32>
    tpu.vector_store %arg5[%c0_7, %c0_8, %c0_9], %6 {strides = array<i32>} : memref<4x8x32xf32, #tpu.memory_space<vmem>>, vector<4x8x32xf32>,
    return
  }
  func.func @transform_0(%arg0: i32, %arg1: i32) -> (i32, i32, i32) {
    %c0_i32 = arith.constant 0 : i32
    %c0_i32_0 = arith.constant 0 : i32
    %c0_i32_1 = arith.constant 0 : i32
    return %arg0, %c0_i32, %c0_i32_0 : i32, i32, i32
  }
  func.func @transform_1(%arg0: i32, %arg1: i32) -> (i32, i32, i32) {
    %c0_i32 = arith.constant 0 : i32
    %c0_i32_0 = arith.constant 0 : i32
    return %arg0, %arg1, %c0_i32 : i32, i32, i32
  }
  func.func @transform_2(%arg0: i32, %arg1: i32) -> (i32, i32) {
    %c0_i32 = arith.constant 0 : i32
    return %arg0, %arg1 : i32, i32
  }
  func.func @transform_3(%arg0: i32, %arg1: i32) -> (i32, i32, i32) {
    %c0_i32 = arith.constant 0 : i32
    %c0_i32_0 = arith.constant 0 : i32
    return %arg0, %c0_i32, %arg1 : i32, i32, i32
  }
}

</mosaic_0001>

<bundles_post_ra>
// kernel: tpu_custom_call.1
= control target key start
LH: loop header
LB: loop body
LE: loop exit
PB: predicated region body
PF: predicated region fallthrough
CT: control target
= control target key end

     0   :  { %8 = vsyncpa [#allocation3], 0  ;;  %s457_s0 = inlined_call_operand.hbm [shape: f32[4,8,32], index: 0, kind: input, shape index: {}]   ;;  %s458_s1 = inlined_call_operand.hbm [shape: f32[4,32,32], index: 1, kind: input, shape index: {}]   ;;  %s459_s2 = inlined_call_operand.hbm [shape: f32[4,32], index: 2, kind: input, shape index: {}]   ;;  %s460_s3 = inlined_call_operand.hbm [shape: f32[4,8,32], index: 3, kind: output, shape index: {}]  }
   0x1   :  { %9 = vsyncpa [#allocation6], 0 }
   0x2   :  { %10 = vsyncpa [#allocation4], 0  ;;  %s28_s14 = sshll.u32 %s458_s1, 4  ;;  %s386_s15 = smov [#allocation5]   ;;  %s29_s14 = int_to_ptr.hbm [resolvable:$true] %s28_s14 }
   0x3   :  { %s30_s16 = sshll.u32 %s386_s15, 4  ;;  %s15_s19 = sshll.u32 %s457_s0, 4  ;;  %s31_s16 = int_to_ptr.vmem [resolvable:$true] %s30_s16  ;;  %s16_s19 = int_to_ptr.hbm [resolvable:$true] %s15_s19 }
   0x4   :  { %s387_s20 = smov 128   ;;  %s388_s21 = smov 8  }
   0x5   :  { %36 = dma.hbm_to_vmem [thread:$0]  %s29_s14, 2048, %s31_s16, [#allocation6], %s387_s20, %s387_s20, %s388_s21  }
   0x6   :  { %s389_s22 = smov [#allocation2]   ;;  %s42_s1 = sshll.u32 %s459_s2, 4  ;;  %s43_s1 = int_to_ptr.hbm [resolvable:$true] %s42_s1 }
   0x7   :  { %s17_s23 = sshll.u32 %s389_s22, 4  ;;  %s390_s0 = smov [#allocation7]   ;;  %s18_s23 = int_to_ptr.vmem [resolvable:$true] %s17_s23 }
   0x8   :  { %23 = dma.hbm_to_vmem [thread:$0]  %s16_s19, 512, %s18_s23, [#allocation3], %s387_s20, %s387_s20, %s388_s21  }
   0x9   :  { %s44_s26 = sshll.u32 %s390_s0, 4  ;;  %s45_s26 = int_to_ptr.vmem [resolvable:$true] %s44_s26 }
   0xa   :  { %47 = dma.hbm_to_vmem [thread:$0]  %s43_s1, 64, %s45_s26, [#allocation6]  }
   0xb   :  { %380 = dma.done.wait [#allocation3], 512  }
   0xc   :  { %381 = vsyncadd [#allocation3], 4294966784 }
   0xd   :  { %382 = dma.done.wait [#allocation6], 2112  }
   0xe   :  { %383 = vsyncadd [#allocation6], 4294965184  ;;  %vm93_vm0 = vcmask 261120   ;;  %v75_v0 = vld [vmem:[#allocation5 + $0x58] sm:$0xff]  ;;  %v74_v4 = vld [vmem:[#allocation5 + $0x50] sm:$0xff]  ;;  %s391_s2 = smov [#allocation8]  }
   0xf   :  { %v79_v1 = vld [vmem:[#allocation5 + $0x78] sm:$0xff]  ;;  %268 = vmatpush.xpose.msk.msra.mxu2 %vm93_vm0, %v75_v0  ;;  %v78_v5 = vld [vmem:[#allocation5 + $0x70] sm:$0xff]  ;;  %v73_v8 = vld [vmem:[#allocation5 + $0x48] sm:$0xff]  ;;  %s242_s27 = sshll.u32 %s391_s2, 4  ;;  %s244_s30 = sshll.u32 %s460_s3, 4  ;;  %s243_s27 = int_to_ptr.vmem [resolvable:$true] %s242_s27  ;;  %s245_s30 = int_to_ptr.hbm [resolvable:$true] %s244_s30 }
  0x10   :  { %273 = vmatpush.xpose.msk.msra.mxu3 %vm93_vm0, %v79_v1  ;;  %v67_v2 = vld [vmem:[#allocation5 + $0x18] sm:$0xff]  ;;  %v66_v6 = vld [vmem:[#allocation5 + $0x10] sm:$0xff]  ;;  %v77_v9 = vld [vmem:[#allocation5 + $0x68] sm:$0xff] }
  0x11   :  { %v71_v3 = vld [vmem:[#allocation5 + $0x38] sm:$0xff]  ;;  %258 = vmatpush.xpose.msk.msra.mxu0 %vm93_vm0, %v67_v2  ;;  %v70_v7 = vld [vmem:[#allocation5 + $0x30] sm:$0xff]  ;;  %v65_v10 = vld [vmem:[#allocation5 + $0x8] sm:$0xff] }
  0x12   :  { %263 = vmatpush.xpose.msk.msra.mxu1 %vm93_vm0, %v71_v3  ;;  %v69_v11 = vld [vmem:[#allocation5 + $0x28] sm:$0xff]  ;;  %v72_v12 = vld [vmem:[#allocation5 + $0x40] sm:$0xff]  ;;  %v62_v16 = vld [vmem:[#allocation2 + $0x10] sm:$0xff] }
  0x13   :  { %269 = vmatpush.xpose.msk.msra.mxu2 %vm93_vm0, %v74_v4  ;;  %v76_v13 = vld [vmem:[#allocation5 + $0x60] sm:$0xff]  ;;  %v63_v17 = vld [vmem:[#allocation2 + $0x18] sm:$0xff]  ;;  %v61_v19 = vld [vmem:[#allocation2 + $0x8] sm:$0xff] }
  0x14   :  { %274 = vmatpush.xpose.msk.msra.mxu3 %vm93_vm0, %v78_v5  ;;  %v64_v14 = vld [vmem:[#allocation5] sm:$0xff] }
  0x15   :  { %259 = vmatpush.xpose.msk.msra.mxu0 %vm93_vm0, %v66_v6  ;;  %v68_v15 = vld [vmem:[#allocation5 + $0x20] sm:$0xff] }
  0x16   :  { %264 = vmatpush.xpose.msk.msra.mxu1 %vm93_vm0, %v70_v7  ;;  %v60_v18 = vld [vmem:[#allocation2] sm:$0xff] }
  0x17   :  { %270 = vmatpush.xpose.msk.msra.mxu2 %vm93_vm0, %v73_v8  ;;  %v80_v20 = vld [vmem:[#allocation7] sm:$0xf] }
  0x18   :  { %275 = vmatpush.xpose.msk.msra.mxu3 %vm93_vm0, %v77_v9  ;;  %v82_v21 = vrot.slane %v80_v20, 1  ;;  %v85_v22 = vperm.slane %v80_v20, 0  ;;  %v83_v24 = vrot.slane %v80_v20, 2  ;;  %v84_v25 = vrot.slane %v80_v20, 3 }
  0x19   :  { %260 = vmatpush.xpose.msk.msra.mxu0 %vm93_vm0, %v65_v10 }
  0x1a   :  { %265 = vmatpush.xpose.msk.msra.mxu1 %vm93_vm0, %v69_v11  ;;  %v86_v23 = vperm.slane %v82_v21, 0  ;;  %v87_v30 = vperm.slane %v83_v24, 0  ;;  %v88_v31 = vperm.slane %v84_v25, 0 }
  0x1b   :  { %271 = vmatpush.xpose.msk.msra.mxu2 %vm93_vm0, %v72_v12 }
  0x1c   :  { %276 = vmatpush.xpose.msk.msra.mxu3 %vm93_vm0, %v76_v13 }
  0x1d   :  { %261 = vmatpush.xpose.msk.msra.mxu0 %vm93_vm0, %v64_v14 }
  0x1e   :  { %266 = vmatpush.xpose.msk.msra.mxu1 %vm93_vm0, %v68_v15  ;;  %272 = vmatmul.msk.f32.vlgmr.msra.gmra.mxu2 %vm93_vm0, %v62_v16 }
  0x1f   :  { %277 = vmatmul.msk.f32.vlgmr.msra.gmra.mxu3 %vm93_vm0, %v63_v17 }
  0x20   :  { %262 = vmatmul.msk.f32.vlgmr.msra.gmra.mxu0 %vm93_vm0, %v60_v18 }
  0x21   :  { %267 = vmatmul.msk.f32.vlgmr.msra.gmra.mxu1 %vm93_vm0, %v61_v19 }
  0x9d   :  { %v126_v26 = vpop.f32.mrf.mxu0 }
  0x9e   :  { %v161_v27 = vpop.f32.mrf.mxu1  ;;  %v127_v28 = vadd.f32 %v126_v26, %v85_v22 }
  0x9f   :  { %v162_v29 = vadd.f32 %v161_v27, %v86_v23 }
  0xa0   :  { %234 = vst.msk [vmem:[#allocation8] sm:$0xff] %vm93_vm0, %v127_v28 }
  0xa1   :  { %235 = vst.msk [vmem:[#allocation8 + $0x8] sm:$0xff] %vm93_vm0, %v162_v29  ;;  %v196_v32 = vpop.f32.mrf.mxu2 }
  0xa2   :  { %v231_v33 = vpop.f32.mrf.mxu3  ;;  %v197_v34 = vadd.f32 %v196_v32, %v87_v30 }
  0xa3   :  { %v232_v35 = vadd.f32 %v231_v33, %v88_v31 }
  0xa4   :  { %236 = vst.msk [vmem:[#allocation8 + $0x10] sm:$0xff] %vm93_vm0, %v197_v34 }
  0xa5   :  { %237 = vst.msk [vmem:[#allocation8 + $0x18] sm:$0xff] %vm93_vm0, %v232_v35 }
  0xa6   :  { %250 = dma.vmem_to_hbm [thread:$0]  %s243_s27, 512, %s245_s30, [#allocation4], %s387_s20, %s387_s20, %s388_s21  }
  0xa7   :  { %384 = dma.done.wait [#allocation4], 512  }
  0xa8   :  { %385 = vsyncadd [#allocation4], 4294966784 }
  0xa9   :  { %255 = vsyncpa [#allocation3], 1 }
  0xaa   :  { %256 = vsyncpa [#allocation6], 1 }
  0xab   :  { %257 = vsyncpa [#allocation4], 1 }

</bundles_post_ra>
